<compile_context>
chip_gen: v7x
topology: tpu7x:2x2x1
jax: 0.10.0
libtpu: 0.0.40
codegen_flags: <defaults>
</compile_context>

<pallas_src>
import functools
import math

import jax
import jax.numpy as jnp
from jax.experimental import pallas as pl
from jax.experimental.pallas import tpu as pltpu

_TINY_BYTES = 1 << 14  # below this, plain XLA beats the kernel fixed cost


def _sum_dim0_kernel(x_ref, o_ref, acc_ref, *, rows, tn, pack, scale,
                     needs_mask):
    """Column sums of the (rows, W) input; finalizes o = sum * scale.

    Grid = (W // td, cdiv(rows, tn)); axis 0 is the lane-parallel axis, axis 1
    (last) is the row-reduction axis.
    """
    i = pl.program_id(1)
    last = pl.num_programs(1) - 1

    @pl.when(i == 0)
    def _():
        acc_ref[...] = jnp.zeros_like(acc_ref)

    def accumulate(mask_tail):
        x = x_ref[...].astype(jnp.float32)
        if mask_tail:
            row = jax.lax.broadcasted_iota(jnp.int32, x.shape, 0) + i * tn
            x = jnp.where(row < rows, x, 0.0)
        td = x.shape[-1]
        # Sublane-packed partial sums: (tn, td) -> (tn//pack, pack, td), reduce
        # the leading axis = pure VPU adds into the resident accumulator.
        acc_ref[...] += jnp.sum(x.reshape(tn // pack, pack, td), axis=0)

    if needs_mask:
        # Pay the iota/compare/select only on the single tail step; all other
        # steps in this DMA-bound loop stay plain loads + adds.
        @pl.when(i < last)
        def _():
            accumulate(False)

        @pl.when(i == last)
        def _():
            accumulate(True)
    else:
        accumulate(False)

    @pl.when(i == last)
    def _():
        # One cross-sublane (XLU) reduce per lane block, then scale and cast.
        s = jnp.sum(acc_ref[...], axis=0, keepdims=True)
        o_ref[...] = (s * scale).astype(o_ref.dtype)


def _vmem_budgets():
    """Returns (tile_budget_bytes, vmem_limit_bytes) for the current chip."""
    cap = None
    try:
        cap = int(pltpu.get_tpu_info().vmem_capacity_bytes)
    except Exception:
        try:
            kind = jax.devices()[0].device_kind.lower()
            if "v5" in kind or "v6" in kind:
                cap = 128 * 1024 * 1024
        except Exception:
            pass
    if cap is not None and cap >= 128 * 1024 * 1024:
        # v5e / v6e: 128 MiB physical VMEM -> ~18 MiB per input buffer.
        return 54 * 1024 * 1024, 64 * 1024 * 1024
    # v7x-class (64 MiB per TensorCore) or unknown: stay conservative.
    return 40 * 1024 * 1024, 48 * 1024 * 1024


def _sum_dim0_pallas(x, *, scale, out_dtype, tn_cap=None):
    """Pallas call computing (sum over rows of x) * scale, shape (W,)."""
    rows, width = x.shape
    itemsize = jnp.dtype(x.dtype).itemsize
    # Sublane pack of the input dtype (f32 -> 8, bf16 -> 16, int8/fp8 -> 32).
    pack = {4: 8, 2: 16, 1: 32}.get(itemsize, 8)

    # Lane tiling: keep blocks lane-dense and, when possible, give the
    # parallel axis >= 2 blocks so both v7x TensorCores get work.
    td = width
    if width % 128 == 0 and width >= 256:
        for cand in (1024, 512, 256, 128):
            if width % cand == 0 and width // cand >= 2:
                td = cand
                break

    # Row tile: largest sublane-pack multiple whose *lane-padded*,
    # double-buffered footprint plus the in-kernel f32 upcast temp fits the
    # per-chip tile budget.
    tile_budget, vmem_limit = _vmem_budgets()
    td_pad = pl.cdiv(td, 128) * 128
    bytes_per_row = td_pad * (2 * itemsize + 4)
    tn_max = max(pack, (tile_budget // bytes_per_row) // pack * pack)
    if tn_cap is not None:
        tn_max = max(pack, min(tn_max, (tn_cap // pack) * pack))
    rows_padded = pl.cdiv(rows, pack) * pack
    tn = min(tn_max, rows_padded)

    grid = (width // td, pl.cdiv(rows, tn))
    needs_mask = (rows % tn) != 0

    kernel = functools.partial(
        _sum_dim0_kernel, rows=rows, tn=tn, pack=pack, scale=scale,
        needs_mask=needs_mask)

    out = pl.pallas_call(
        kernel,
        out_shape=jax.ShapeDtypeStruct((1, width), out_dtype),
        grid_spec=pltpu.PrefetchScalarGridSpec(
            num_scalar_prefetch=0,
            grid=grid,
            in_specs=[pl.BlockSpec((tn, td), lambda j, i: (i, j))],
            out_specs=pl.BlockSpec((1, td), lambda j, i: (0, j)),
            scratch_shapes=[pltpu.VMEM((pack, td), jnp.float32)],
        ),
        compiler_params=pltpu.CompilerParams(
            dimension_semantics=("parallel", "arbitrary"),
            vmem_limit_bytes=vmem_limit,
        ),
        cost_estimate=pl.CostEstimate(
            flops=int(rows * width),
            transcendentals=0,
            bytes_accessed=int(rows * width * itemsize
                               + width * jnp.dtype(out_dtype).itemsize),
        ),
    )(x)
    return out[0]


def avg_pool_dim0(x: jax.Array, *, force_pallas: bool = False,
                  tn_cap=None) -> jax.Array:
    """Pallas equivalent of AvgPoolLayer.forward: mean over dim 0 of (N, D)."""
    assert x.ndim == 2, "expected an (N, D) node-feature matrix"
    N, D = x.shape
    itemsize = jnp.dtype(x.dtype).itemsize

    # Tiny graphs: kernel fixed cost dwarfs the reduction -> plain XLA.
    if not force_pallas and N * D * itemsize <= _TINY_BYTES:
        return jnp.mean(x, axis=0)

    # Layout plumbing only (metadata reshape of the contiguous row-major
    # (N, D)): fold f consecutive rows into one lane-dense row of width f*D so
    #  (a) the lane dim is a multiple of 128 (no VMEM lane padding), and
    #  (b) the parallel grid axis has >= 2 blocks (v7x megacore).
    # Only done when N % f == 0, i.e. when it costs no data movement.
    f = 1
    if D % 128 != 0:
        g = 128 // math.gcd(D, 128)
        if N % g == 0:
            f = g
    if (f * D) % 128 == 0:
        while f * D < 256 and N % (2 * f) == 0:
            f *= 2
    # Note: for small / non-128-divisible D where no free fold exists, a v7x
    # core-parallel N-split could still recover the idle TensorCore; the
    # lane-padded fallback below is correct but single-core on v7x.

    inv_n = 1.0 / N
    if f == 1:
        return _sum_dim0_pallas(x, scale=inv_n, out_dtype=x.dtype,
                                tn_cap=tn_cap)

    folded = x.reshape(N // f, f * D)
    # Kernel emits per-fold-position partial means (already scaled by 1/N) in
    # f32; fold them back to (D,) and cast in the wrapper (tiny O(f*D) op).
    part = _sum_dim0_pallas(folded, scale=inv_n, out_dtype=jnp.float32,
                            tn_cap=tn_cap)
    return part.reshape(f, D).sum(axis=0).astype(x.dtype)


if __name__ == "__main__":
    key = jax.random.PRNGKey(0)
    # (shape, dtype, force_pallas, tn_cap) -- small shapes consistent with a
    # per-graph node-feature matrix; tn_cap is test-only, to force multi-step
    # reduction regardless of the detected chip's VMEM budget.
    cases = [
        ((16, 32), jnp.float32, True, None),     # folded lane-dense path
        ((13, 48), jnp.float32, True, None),     # non-128 D fallback + tail mask
        ((520, 256), jnp.float32, False, None),  # natural dispatch, 2 parallel D blocks
        ((520, 256), jnp.float32, True, 64),     # multi-step reduction + tail mask
        ((96, 256), jnp.bfloat16, True, None),   # sub-32-bit input (pack=16)
    ]
    for shape, dtype, force, cap in cases:
        key, sub = jax.random.split(key)
        x = jax.random.normal(sub, shape, dtype=jnp.float32).astype(dtype)
        y = jax.block_until_ready(
            avg_pool_dim0(x, force_pallas=force, tn_cap=cap))
        ref = jnp.mean(x.astype(jnp.float32), axis=0)
        assert y.shape == (shape[1],), (y.shape, shape)
        assert y.dtype == x.dtype, (y.dtype, x.dtype)
        tol = 1e-5 if dtype == jnp.float32 else 2e-2
        assert jnp.allclose(y.astype(jnp.float32), ref, atol=tol, rtol=tol), shape

    print("KERNEL_OK")
</pallas_src>

<mosaic_0001>
module attributes {stable_mosaic.version = 11 : i64} {
  func.func @_sum_dim0_kernel(%arg0: i32, %arg1: i32, %arg2: memref<8x128xf32, #tpu.memory_space<vmem>>, %arg3: memref<1x128xf32, #tpu.memory_space<vmem>>, %arg4: memref<8x128xf32, #tpu.memory_space<vmem>>) attributes {dimension_semantics = [#tpu.dimension_semantics<parallel>, #tpu.dimension_semantics<arbitrary>], iteration_bounds = array<i64: 2, 1>, scalar_prefetch = 0 : i64, scratch_operands = 1 : i64, tpu.core_type = #tpu.core_type<tc>, window_params = [{transform_indices = @transform_0, window_bounds = array<i64: 8, 128>}, {transform_indices = @transform_1, window_bounds = array<i64: 1, 128>}]} {
    %c0_i32 = arith.constant 0 : i32
    %0 = arith.cmpi eq, %arg1, %c0_i32 : i32
    %1 = arith.extui %0 : i1 to i32
    %c0_i32_0 = arith.constant 0 : i32
    %2 = arith.cmpi ne, %1, %c0_i32_0 : i32
    scf.if %2 {
      %cst = arith.constant 0.000000e+00 : f32
      %12 = vector.broadcast %cst : f32 to vector<8x128xf32>
      %c0 = arith.constant 0 : index
      %c0_7 = arith.constant 0 : index
      %13 = vector.load %arg4[%c0, %c0_7] : memref<8x128xf32, #tpu.memory_space<vmem>>, vector<8x128xf32>
      tpu.vector_store %arg4[%c0, %c0_7], %12 {strides = array<i32>} : memref<8x128xf32, #tpu.memory_space<vmem>>, vector<8x128xf32>,
    } else {
    }
    %c0_i32_1 = arith.constant 0 : i32
    %3 = arith.cmpi slt, %arg1, %c0_i32_1 : i32
    %4 = arith.extui %3 : i1 to i32
    %c0_i32_2 = arith.constant 0 : i32
    %5 = arith.cmpi ne, %4, %c0_i32_2 : i32
    scf.if %5 {
      %c0 = arith.constant 0 : index
      %c0_7 = arith.constant 0 : index
      %12 = vector.load %arg2[%c0, %c0_7] : memref<8x128xf32, #tpu.memory_space<vmem>>, vector<8x128xf32>
      %c0_8 = arith.constant 0 : index
      %c0_9 = arith.constant 0 : index
      %13 = vector.load %arg4[%c0_8, %c0_9] : memref<8x128xf32, #tpu.memory_space<vmem>>, vector<8x128xf32>
      %14 = vector.shape_cast %12 : vector<8x128xf32> to vector<1x8x128xf32>
      %cst = arith.constant dense<0.000000e+00> : vector<8x128xf32>
      %15 = vector.multi_reduction <add>, %14, %cst [0] : vector<1x8x128xf32> to vector<8x128xf32>
      %16 = arith.addf %13, %15 : vector<8x128xf32>
      %c0_10 = arith.constant 0 : index
      %c0_11 = arith.constant 0 : index
      %17 = vector.load %arg4[%c0_10, %c0_11] : memref<8x128xf32, #tpu.memory_space<vmem>>, vector<8x128xf32>
      tpu.vector_store %arg4[%c0_10, %c0_11], %16 {strides = array<i32>} : memref<8x128xf32, #tpu.memory_space<vmem>>, vector<8x128xf32>,
    } else {
    }
    %c0_i32_3 = arith.constant 0 : i32
    %6 = arith.cmpi eq, %arg1, %c0_i32_3 : i32
    %7 = arith.extui %6 : i1 to i32
    %c0_i32_4 = arith.constant 0 : i32
    %8 = arith.cmpi ne, %7, %c0_i32_4 : i32
    scf.if %8 {
      %c0 = arith.constant 0 : index
      %c0_7 = arith.constant 0 : index
      %12 = vector.load %arg2[%c0, %c0_7] : memref<8x128xf32, #tpu.memory_space<vmem>>, vector<8x128xf32>
      %13 = tpu.iota {dimensions = array<i32: 0>} : vector<8x128xi32>
      %c8_i32 = arith.constant 8 : i32
      %14 = arith.muli %arg1, %c8_i32 : i32
      %15 = vector.broadcast %14 : i32 to vector<8x128xi32>
      %16 = arith.addi %13, %15 : vector<8x128xi32>
      %c2_i32 = arith.constant 2 : i32
      %17 = vector.broadcast %c2_i32 : i32 to vector<8x128xi32>
      %18 = arith.cmpi slt, %16, %17 : vector<8x128xi32>
      %cst = arith.constant 0.000000e+00 : f32
      %19 = vector.broadcast %cst : f32 to vector<8x128xf32>
      %20 = arith.select %18, %12, %19 : vector<8x128xi1>, vector<8x128xf32>
      %c0_8 = arith.constant 0 : index
      %c0_9 = arith.constant 0 : index
      %21 = vector.load %arg4[%c0_8, %c0_9] : memref<8x128xf32, #tpu.memory_space<vmem>>, vector<8x128xf32>
      %22 = vector.shape_cast %20 : vector<8x128xf32> to vector<1x8x128xf32>
      %cst_10 = arith.constant dense<0.000000e+00> : vector<8x128xf32>
      %23 = vector.multi_reduction <add>, %22, %cst_10 [0] : vector<1x8x128xf32> to vector<8x128xf32>
      %24 = arith.addf %21, %23 : vector<8x128xf32>
      %c0_11 = arith.constant 0 : index
      %c0_12 = arith.constant 0 : index
      %25 = vector.load %arg4[%c0_11, %c0_12] : memref<8x128xf32, #tpu.memory_space<vmem>>, vector<8x128xf32>
      tpu.vector_store %arg4[%c0_11, %c0_12], %24 {strides = array<i32>} : memref<8x128xf32, #tpu.memory_space<vmem>>, vector<8x128xf32>,
    } else {
    }
    %c0_i32_5 = arith.constant 0 : i32
    %9 = arith.cmpi eq, %arg1, %c0_i32_5 : i32
    %10 = arith.extui %9 : i1 to i32
    %c0_i32_6 = arith.constant 0 : i32
    %11 = arith.cmpi ne, %10, %c0_i32_6 : i32
    scf.if %11 {
      %c0 = arith.constant 0 : index
      %c0_7 = arith.constant 0 : index
      %12 = vector.load %arg4[%c0, %c0_7] : memref<8x128xf32, #tpu.memory_space<vmem>>, vector<8x128xf32>
      %cst = arith.constant dense<0.000000e+00> : vector<128xf32>
      %13 = vector.multi_reduction <add>, %12, %cst [0] : vector<8x128xf32> to vector<128xf32>
      %14 = vector.shape_cast %13 : vector<128xf32> to vector<1x128xf32>
      %cst_8 = arith.constant 6.250000e-02 : f32
      %15 = vector.broadcast %cst_8 : f32 to vector<1x128xf32>
      %16 = arith.mulf %14, %15 : vector<1x128xf32>
      %c0_9 = arith.constant 0 : index
      %c0_10 = arith.constant 0 : index
      %17 = vector.load %arg3[%c0_9, %c0_10] : memref<1x128xf32, #tpu.memory_space<vmem>>, vector<1x128xf32>
      tpu.vector_store %arg3[%c0_9, %c0_10], %16 {strides = array<i32>} : memref<1x128xf32, #tpu.memory_space<vmem>>, vector<1x128xf32>,
    } else {
    }
    return
  }
  func.func @transform_0(%arg0: i32, %arg1: i32) -> (i32, i32) {
    %c0_i32 = arith.constant 0 : i32
    return %arg1, %arg0 : i32, i32
  }
  func.func @transform_1(%arg0: i32, %arg1: i32) -> (i32, i32) {
    %c0_i32 = arith.constant 0 : i32
    %c0_i32_0 = arith.constant 0 : i32
    return %c0_i32, %arg0 : i32, i32
  }
}

</mosaic_0001>

<bundles_post_ra>
// kernel: tpu_custom_call.1
= control target key start
LH: loop header
LB: loop body
LE: loop exit
PB: predicated region body
PF: predicated region fallthrough
CT: control target
= control target key end

     0   :  { %6 = vsyncpa [#allocation4], 0  ;;  %s632_s0 = inlined_call_operand.hbm [shape: f32[2,256], index: 0, kind: input, shape index: {}]   ;;  %s633_s1 = inlined_call_operand.hbm [shape: f32[1,256], index: 1, kind: output, shape index: {}]  }
   0x1   :  { %8 = vsyncpa [#allocation4 + $0x1], 0 }
   0x2   :  { %9 = vsyncpa [#allocation5], 0 }
   0x3   :  { %11 = vsyncpa [#allocation5 + $0x1], 0  ;;  %s478_s6 = smov 0   ;;  %s480_s7 = smov 0  }
   0x4   :  { %s482_s8 = smov 0   ;;  %s484_s9 = smov 0  }
   0x5   :  { %s486_s10 = smov 0   ;;  %s488_s11 = smov 0  }
   0x6 LB: > { %s284_s12 = sadd.s32 4294967295, %s461_s11   ;;  %s285_s13 = sadd.s32 4294967294, %s461_s11   ;;  %s461_s11 = sphi %s488_s11, %s17_s11   ;;  %s457_s10 = sphi %s486_s10, %s644_s10   ;;  %s453_s9 = sphi %s484_s9, %s643_s9   ;;  %s449_s8 = sphi %s482_s8, %s642_s8   ;;  %s445_s7 = sphi %s480_s7, %s641_s7   ;;  %s441_s6 = sphi %s478_s6, %s640_s6  }
   0x7   : > { %s29_s14 = sadd.s32 1, %s457_s10  ;;  %s38_s15 = sadd.s32 1, %s449_s8 }
   0x8   : > { %p31_p0 = scmp.ge.s32.totalorder %s29_s14, 2  ;;  %p45_p1 = scmp.ne.s32.totalorder %s449_s8, %s445_s7 }
   0x9   : > { %p46_p2 = scmp.eq.s32.totalorder %s461_s11, 0  ;;  %p51_p3 = scmp.ne.s32.totalorder %s445_s7, %s441_s6 }
   0xa   : > { %s646_s14 = smov (%p31_p0, %s29_s14), 0  ;;  %p52_p5 = scmp.eq.s32.totalorder %s284_s12, 0 }
   0xb   : > { %p47_p4 = por %p46_p2, %p45_p1  ;;  %s34_s16 = ssub.s32 %s457_s10, %s646_s14 }
   0xc   : > { %p75_p6 = scmp.eq.s32.totalorder %s284_s12, 1  ;;  %p36_p7 = scmp.eq.s32.totalorder %s34_s16, 0 }
   0xd   : > { %p521_p8 = por %p52_p5, %p51_p3  ;;  %p81_p10 = scmp.eq.s32.totalorder %s285_s13, 1 }
   0xe   : > { %p525_p9 = por %p75_p6, %p45_p1  ;;  %p634_p12 = scmp.ge.s32.totalorder %s461_s11, 2 }
   0xf   : > { %s530_s19 = scalar_select %p36_p7, %s449_s8, %s38_s15  }
  0x10   : > { %p532_p11 = por %p81_p10, %p51_p3  ;;  %97 = sbr.rel (%p634_p12) target bundleno = 55 (0x37), region = 16 }
  0x12   : > { %s637_s20 = scalar_select %p532_p11, 1, 0 }
  0x17   : > { %100 = sbr.rel (!%p47_p4) target bundleno = 55 (0x37), region = 20  ;;  %s101_s21 = sand.u32 (%p47_p4), 1, %s449_s8  }
  0x18   : > { %s288_s22 = sshll.u32 (%p47_p4), %s101_s21, 3  ;;  %s540_s23 = scalar_lea.sflag (%p47_p4), [#allocation4], %s101_s21 }
  0x19   : > { %s105_s24 = scalar_lea.vmem (%p47_p4), [#allocation3], %s288_s22 }
  0x1e   : > { %111 = vsyncadd %s540_s23, 96  ;;  %s289_s25 = sshll.u32 %s457_s10, 5  ;;  %s118_s26 = sshll.u32 %s105_s24, 4  ;;  %s549_s26 = int_to_ptr.vmem [resolvable:$true] %s118_s26 }
  0x1f   : > { %s547_s29 = scalar_lea.hbm %s632_s0, %s289_s25  ;;  %s357_s4 = scalar_lea.hbm %s632_s0, 64 }
  0x20   : > { %s355_s30 = scalar_lea.hbm %s547_s29, 32  ;;  %p358_p0 = scmp.lt.u32.totalorder %s547_s29, %s632_s0 }
  0x21   : > { %p356_p13 = scmp.ne.s32.totalorder %s547_s29, %s355_s30  ;;  %p359_p1 = scmp.lt.u32.totalorder %s357_s4, %s355_s30 }
  0x22   : > { %p361_p3 = scmp.lt.u32.totalorder %s355_s30, %s547_s29 }
  0x23   : > { %p360_p2 = por %p359_p1, %p358_p0 }
  0x25   : > { %p362_p4 = por %p361_p3, %p360_p2 }
  0x27   : > { %p363_p5 = pnand %p362_p4, %p356_p13 }
  0x29   : > { %366 = shalt.err (!%p363_p5)
}
  0x2a   : > { %s367_s13 = scalar_lea.vmem %s549_s26, 32  ;;  %s463_s15 = smov [#allocation3]  }
  0x2b   : > { %p368_p6 = scmp.ne.s32.totalorder %s549_s26, %s367_s13  ;;  %s369_s16 = sshll.u32 %s463_s15, 4  ;;  %s370_s16 = int_to_ptr.vmem [resolvable:$false] %s369_s16 }
  0x2c   : > { %s371_s21 = scalar_lea.vmem %s370_s16, 256  ;;  %p372_p7 = scmp.lt.s32.totalorder %s549_s26, %s370_s16 }
  0x2d   : > { %p373_p10 = scmp.lt.s32.totalorder %s371_s21, %s367_s13 }
  0x2f   : > { %p374_p12 = por %p373_p10, %p372_p7 }
  0x31   : > { %p375_p11 = pnand %p374_p12, %p368_p6 }
  0x33   : > { %378 = shalt.err (!%p375_p11)
}
  0x34   : > { %s464_s22 = smov 64   ;;  %s465_s24 = smov 32  }
  0x35   : > { %s466_s25 = smov 2  }
  0x36   : > { %124 = dma.hbm_to_vmem [thread:$0]  %s547_s29, 32, %s549_s26, %s540_s23, %s464_s22, %s465_s24, %s466_s25  }
  0x37 PF: > { %p290_p13 = scmp.ge.s32.totalorder %s461_s11, 1  ;;  %p126_p0 = scmp.lt.s32.totalorder %s461_s11, 3 }
  0x39   : > { %p127_p1 = pnand %p290_p13, %p126_p0 }
  0x3a   : > { %s570_s27 = sand.u32 (!%p127_p1), 1, %s445_s7  }
  0x3b   : > { %130 = sbr.rel (%p127_p1) target bundleno = 96 (0x60), region = 24  ;;  %s291_s28 = sshll.u32 (!%p127_p1), %s570_s27, 3 }
  0x3c   : > { %s133_s30 = scalar_lea.sflag (!%p127_p1), [#allocation4], %s570_s27  ;;  %s136_s2 = scalar_lea.vmem (!%p127_p1), [#allocation3], %s291_s28 }
  0x42   : > { %432 = dma.done.wait (%p521_p8), %s133_s30, 128  }
  0x43   : > { %434 = vsyncadd (%p521_p8), %s133_s30, 4294967168  ;;  %v292_v0 = vld [vmem:[%s136_s2] sm:$0x3]  ;;  %s153_s23 = scalar_lea.vmem [#allocation6], %s570_s27  ;;  %s293_s29 = sshll.u32 %s453_s9, 4 }
  0x44   : > { %v187_v1 = vrot.slane %v292_v0, 4  ;;  %s208_s26 = sshll.u32 %s153_s23, 4  ;;  %s585_s4 = scalar_lea.hbm %s633_s1, %s293_s29  ;;  %s580_s26 = int_to_ptr.vmem [resolvable:$true] %s208_s26 }
  0x45   : > { %s196_s5 = scalar_lea.sflag [#allocation5], %s570_s27  ;;  %s379_s12 = scalar_lea.vmem %s580_s26, 16 }
  0x46   : > { %v188_v2 = vadd.f32 %v292_v0, %v187_v1  ;;  %p380_p8 = scmp.ne.s32.totalorder %s580_s26, %s379_s12  ;;  %s467_s9 = smov [#allocation6]  }
  0x47   : > { %s383_s13 = sshll.u32 %s467_s9, 4  ;;  %s384_s13 = int_to_ptr.vmem [resolvable:$false] %s383_s13 }
  0x48   : > { %v189_v3 = vrot.slane %v188_v2, 2  ;;  %p381_p11 = pnand %p380_p8, %p525_p9  ;;  %s385_s15 = scalar_lea.vmem %s384_s13, 32 }
  0x49   : > { %p386_p2 = scmp.lt.s32.totalorder %s580_s26, %s384_s13  ;;  %p387_p3 = scmp.lt.s32.totalorder %s385_s15, %s379_s12 }
  0x4a   : > { %v190_v4 = vadd.f32 %v189_v3, %v188_v2  ;;  %p382_p12 = pneg %p381_p11 }
  0x4b   : > { %p388_p4 = por %p387_p3, %p386_p2 }
  0x4c   : > { %v191_v5 = vrot.slane %v190_v4, 1 }
  0x4d   : > { %p389_p5 = pnand %p388_p4, %p382_p12 }
  0x4e   : > { %v192_v6 = vadd.f32 %v191_v5, %v190_v4 }
  0x50   : > { %v193_v7 = vmul.f32 0.0625, %v192_v6 }
  0x52   : > { %194 = vst [vmem:[%s153_s23] sm:$0x1] %v193_v7 }
  0x53   : > { %392 = shalt.err (!%p389_p5)
}
  0x54   : > { %s393_s16 = scalar_lea.hbm %s585_s4, 16  ;;  %s397_s24 = scalar_lea.hbm %s633_s1, 32 }
  0x55   : > { %p394_p6 = scmp.ne.s32.totalorder %s585_s4, %s393_s16  ;;  %p398_p13 = scmp.lt.u32.totalorder %s585_s4, %s633_s1 }
  0x56   : > { %p399_p0 = scmp.lt.u32.totalorder %s397_s24, %s393_s16  ;;  %p401_p8 = scmp.lt.u32.totalorder %s393_s16, %s585_s4 }
  0x57   : > { %p395_p7 = pnand %p394_p6, %p525_p9 }
  0x58   : > { %p400_p1 = por %p399_p0, %p398_p13 }
  0x59   : > { %p396_p10 = pneg %p395_p7 }
  0x5a   : > { %p402_p11 = por %p401_p8, %p400_p1 }
  0x5c   : > { %p403_p12 = pnand %p402_p11, %p396_p10 }
  0x5e   : > { %406 = shalt.err (!%p403_p12)
}
  0x5f   : > { %297 = dma.vmem_to_hbm [thread:$0]  (%p525_p9), %s580_s26, 16, %s585_s4, %s196_s5  }
  0x60 PF: > { %s220_s28 = sand.u32 1, %s441_s6   ;;  %p638_p2 = scmp.ne.s32.totalorder %s637_s20, 0 }
  0x61   : > { %p639_p3 = scmp.ge.s32.totalorder %s461_s11, 2  ;;  %s221_s30 = scalar_lea.sflag [#allocation5], %s220_s28 }
  0x63   : > { %p300_p4 = pnand %p639_p3, %p638_p2 }
  0x65   : > { %436 = dma.done.wait (!%p300_p4), %s221_s30, 16  }
  0x66   : > { %438 = vsyncadd (!%p300_p4), %s221_s30, 4294967280  ;;  %s17_s11 = sadd.s32 1, %s461_s11   ;;  %s640_s6 = smov %s445_s7 }
  0x67   : > { %p14_p5 = scmp.ge.s32.totalorder %s17_s11, 4   ;;  %s641_s7 = smov %s449_s8 }
  0x68   : > { %s642_s8 = smov %s530_s19  ;;  %s643_s9 = smov %s457_s10 }
  0x69   : > { %s644_s10 = smov %s646_s14  ;;  %16 = sbr.rel (!%p14_p5) target bundleno = 6 (0x6), region = 81 }
  0x70   :  { %225 = vsyncpa [#allocation4], 1 }
  0x71   :  { %227 = vsyncpa [#allocation4 + $0x1], 1 }
  0x72   :  { %228 = vsyncpa [#allocation5], 1 }
  0x73   :  { %230 = vsyncpa [#allocation5 + $0x1], 1 }

</bundles_post_ra>
